<compile_context>
chip_gen: v6e
topology: v6e:2x2x1
jax: 0.10.0
libtpu: 0.0.40
codegen_flags: <defaults>
</compile_context>

<pallas_src>
import math
import functools

import jax
import jax.numpy as jnp
from jax import lax
from jax.experimental import pallas as pl
from jax.experimental.pallas import tpu as pltpu


# ----------------------------- kernel helpers ------------------------------

def _layernorm(x, gamma, beta, eps=1e-5):
    # PyTorch nn.LayerNorm: biased variance, eps inside sqrt. All f32.
    mu = jnp.mean(x, axis=-1, keepdims=True)
    var = jnp.mean(jnp.square(x - mu), axis=-1, keepdims=True)
    return (x - mu) * lax.rsqrt(var + eps) * gamma + beta


def _gelu_tanh(x):
    # tanh-approx GELU (EUP) instead of exact erf (long VPU polynomial).
    # Kept in f32 (v5e has no bf16 VALU/EUP).
    c = math.sqrt(2.0 / math.pi)
    return 0.5 * x * (1.0 + jnp.tanh(c * (x + 0.044715 * x * x * x)))


# --------------------------------- kernel ----------------------------------

def block_kernel(x_ref, mask_ref,
                 g1_ref, be1_ref,
                 wqkv_ref, bqkv_ref,
                 wo_ref, bo_ref,
                 g2_ref, be2_ref,
                 w1_ref, b1_ref, w2_ref, b2_ref,
                 o_ref, *, num_head, head_dim):
    GB, N, D = x_ref.shape
    H, Dh = num_head, head_dim
    HDh = H * Dh
    rows = GB * N

    x = x_ref[...].astype(jnp.float32)            # (GB, N, D)
    xf = x.reshape(rows, D)                       # collapse leading dims (free)

    # ---- norm1 + fused QKV projection (single MXU weight push) ----
    h1 = _layernorm(xf, g1_ref[...], be1_ref[...])
    qkv = jnp.dot(h1.astype(jnp.bfloat16), wqkv_ref[...],
                  preferred_element_type=jnp.float32) + bqkv_ref[...]  # (rows, 3*HDh) f32

    # ---- attention: all heads batched per sequence ----
    scale = 1.0 / math.sqrt(Dh)
    # Penalty kept un-broadcast at (GB, 1, N); the add broadcasts lane-wise.
    pen = -1e6 * (1.0 - mask_ref[...].astype(jnp.float32))             # (GB, 1, N)

    attn_rows = []
    for g in range(GB):                            # static loop; GB is small
        # One relayout per sequence: (N, 3*H*Dh) -> (3*H, Dh, N).  The q/k/v
        # and per-head splits are then leading-dim slices (no lane slicing).
        qkv_t = qkv[g * N:(g + 1) * N, :].T.reshape(3 * H, Dh, N)
        qh = jnp.swapaxes(qkv_t[0 * H:1 * H], 1, 2) * scale            # (H, N, Dh) f32
        kh = jnp.swapaxes(qkv_t[1 * H:2 * H], 1, 2)                    # (H, N, Dh) f32
        v3 = qkv_t[2 * H:3 * H]                                        # (H, Dh, N) f32

        s = jnp.einsum('hqd,hkd->hqk', qh.astype(jnp.bfloat16),
                       kh.astype(jnp.bfloat16),
                       preferred_element_type=jnp.float32)             # (H, N, N) f32
        s = s + pen[g:g + 1]                       # mask penalty, f32
        s = s - jnp.max(s, axis=-1, keepdims=True)
        p = jnp.exp(s)                                                 # f32
        inv_l = pl.reciprocal(jnp.sum(p, axis=-1), approx=True)        # (H, Nq) f32
        # P@V in NT form against the (already transposed) V: output (H, Dh, Nq)
        o_t = jnp.einsum('hdk,hqk->hdq', v3.astype(jnp.bfloat16),
                         p.astype(jnp.bfloat16),
                         preferred_element_type=jnp.float32)
        o_t = o_t * inv_l[:, None, :]              # normalize after the matmul
        attn_rows.append(o_t.reshape(HDh, N).T)    # (N, HDh)

    attn = attn_rows[0] if GB == 1 else jnp.concatenate(attn_rows, axis=0)

    # ---- single full-depth output projection over all heads ----
    attn_out = jnp.dot(attn.astype(jnp.bfloat16), wo_ref[...],
                       preferred_element_type=jnp.float32) + bo_ref[...]
    x1 = attn_out + xf                             # dropout1 -> identity (eval)

    # ---- norm2 + MLP ----
    h2 = _layernorm(x1, g2_ref[...], be2_ref[...])
    m = jnp.dot(h2.astype(jnp.bfloat16), w1_ref[...],
                preferred_element_type=jnp.float32) + b1_ref[...]
    m = _gelu_tanh(m)
    m = jnp.dot(m.astype(jnp.bfloat16), w2_ref[...],
                preferred_element_type=jnp.float32) + b2_ref[...]
    out = m + x1                                   # dropouts -> identity (eval)

    o_ref[...] = out.reshape(GB, N, D).astype(o_ref.dtype)


# -------------------------------- wrapper ----------------------------------

def prepare_block_params(p):
    """One-time weight packing (hoists the Wq/Wk/Wv concat and bf16 casts out
    of the per-call path; reuse the result for weight-stationary inference)."""
    f32, bf16 = jnp.float32, jnp.bfloat16
    return {
        "g1": p["g1"].astype(f32), "be1": p["be1"].astype(f32),
        "wqkv": jnp.concatenate([p["wq"], p["wk"], p["wv"]], axis=1).astype(bf16),
        "bqkv": jnp.concatenate([p["bq"], p["bk"], p["bv"]], axis=1).astype(f32),
        "wo": p["wo"].astype(bf16), "bo": p["bo"].astype(f32),
        "g2": p["g2"].astype(f32), "be2": p["be2"].astype(f32),
        "w1": p["w1"].astype(bf16), "b1": p["b1"].astype(f32),
        "w2": p["w2"].astype(bf16), "b2": p["b2"].astype(f32),
    }


def _choose_group(B, N, *, row_cap=512, min_grid=2):
    """Largest divisor g of B with g*N <= row_cap while keeping at least
    `min_grid` grid steps when possible (v7x has 2 TensorCores: a length-1
    'parallel' grid would idle one of them)."""
    cands = [g for g in range(1, B + 1)
             if B % g == 0 and g * N <= row_cap and B // g >= min_grid]
    if not cands:
        cands = [g for g in range(1, B + 1) if B % g == 0 and g * N <= row_cap] or [1]
    return max(cands)


def block_forward(x, mask, prep, *, num_head, head_dim, group=None, row_cap=512):
    B, N, D = x.shape
    HDh = num_head * head_dim
    F = prep["w1"].shape[1]

    GB = group if group is not None else _choose_group(B, N, row_cap=row_cap)
    assert B % GB == 0, "group must divide batch"
    grid = (B // GB,)

    mask3 = mask.reshape(B, 1, N).astype(jnp.float32)

    kernel = functools.partial(block_kernel, num_head=num_head, head_dim=head_dim)

    # ---- rough VMEM budget -> explicit limit ----
    bf16_w = 2 * (prep["wqkv"].size + prep["wo"].size + prep["w1"].size + prep["w2"].size)
    f32_small = 4 * (prep["bqkv"].size + prep["bo"].size + prep["b1"].size + prep["b2"].size
                     + prep["g1"].size + prep["be1"].size + prep["g2"].size + prep["be2"].size)
    io_blk = 4 * GB * N * (2 * D + 1)
    interm = 4 * GB * N * (3 * HDh + 3 * D + F) + 6 * num_head * N * N
    vmem_limit = int(min(128 * 2 ** 20,
                         max(32 * 2 ** 20,
                             2 * (2 * io_blk + 2 * bf16_w + f32_small + interm))))

    # Single-buffer the grid-invariant weight blocks only when they are large
    # enough for the VMEM saving to matter (halves weight VMEM on v7x's 64 MiB).
    single_buffer_weights = bf16_w > (2 << 20)

    # ---- advisory cost estimate for the XLA scheduler ----
    rows_total = B * N
    flops = int(2 * rows_total * D * (3 * HDh)
                + 4 * B * num_head * N * N * head_dim
                + 2 * rows_total * HDh * D
                + 2 * rows_total * D * F + 2 * rows_total * F * D)
    transcendentals = int(B * num_head * N * N + rows_total * F + 4 * rows_total)
    bytes_accessed = int(2 * x.size * x.dtype.itemsize + mask3.size * 4
                         + bf16_w + f32_small)
    cost = pl.CostEstimate(flops=flops, transcendentals=transcendentals,
                           bytes_accessed=bytes_accessed)

    def build(use_single_buffer):
        def fixed(shape):
            # Whole-array weight block, same block every grid step.
            if use_single_buffer:
                return pl.BlockSpec(shape, lambda b: (0, 0),
                                    pipeline_mode=pl.Buffered(1))
            return pl.BlockSpec(shape, lambda b: (0, 0))

        in_specs = [
            pl.BlockSpec((GB, N, D), lambda b: (b, 0, 0)),   # x
            pl.BlockSpec((GB, 1, N), lambda b: (b, 0, 0)),   # mask
            fixed((1, D)), fixed((1, D)),                    # ln1 gamma/beta
            fixed((D, 3 * HDh)), fixed((1, 3 * HDh)),        # fused Wqkv, bqkv
            fixed((HDh, D)), fixed((1, D)),                  # Wo, bo
            fixed((1, D)), fixed((1, D)),                    # ln2 gamma/beta
            fixed((D, F)), fixed((1, F)),                    # W1, b1
            fixed((F, D)), fixed((1, D)),                    # W2, b2
        ]
        return pl.pallas_call(
            kernel,
            out_shape=jax.ShapeDtypeStruct((B, N, D), x.dtype),
            grid_spec=pltpu.PrefetchScalarGridSpec(
                num_scalar_prefetch=0,
                grid=grid,
                in_specs=in_specs,
                out_specs=pl.BlockSpec((GB, N, D), lambda b: (b, 0, 0)),
            ),
            compiler_params=pltpu.CompilerParams(
                dimension_semantics=("parallel",),
                vmem_limit_bytes=vmem_limit),
            cost_estimate=cost,
        )

    args = (x, mask3,
            prep["g1"], prep["be1"], prep["wqkv"], prep["bqkv"],
            prep["wo"], prep["bo"], prep["g2"], prep["be2"],
            prep["w1"], prep["b1"], prep["w2"], prep["b2"])

    if single_buffer_weights:
        try:
            return build(True)(*args)
        except Exception:
            # pipeline_mode=pl.Buffered(1) not supported on this jax/libtpu:
            # fall back to default double-buffered weights.
            return build(False)(*args)
    return build(False)(*args)


# --------------------------- pure-JAX reference -----------------------------

def block_reference(x, mask, p, *, num_head, head_dim):
    def ln(v, g, b):
        mu = v.mean(-1, keepdims=True)
        var = ((v - mu) ** 2).mean(-1, keepdims=True)
        return (v - mu) / jnp.sqrt(var + 1e-5) * g + b

    B, N, D = x.shape
    h = ln(x, p["g1"][0], p["be1"][0])
    q = (h @ p["wq"] + p["bq"][0]).reshape(B, N, num_head, head_dim).transpose(0, 2, 1, 3)
    k = (h @ p["wk"] + p["bk"][0]).reshape(B, N, num_head, head_dim).transpose(0, 2, 1, 3)
    v = (h @ p["wv"] + p["bv"][0]).reshape(B, N, num_head, head_dim).transpose(0, 2, 1, 3)
    s = (q @ k.transpose(0, 1, 3, 2)) / math.sqrt(head_dim)
    s = s - 1e6 * (1.0 - mask)[:, None, None, :]
    a = jax.nn.softmax(s, axis=-1)
    o = (a @ v).transpose(0, 2, 1, 3).reshape(B, N, num_head * head_dim)
    attn_out = o @ p["wo"] + p["bo"][0]
    x1 = attn_out + x
    h2 = ln(x1, p["g2"][0], p["be2"][0])
    m = jax.nn.gelu(h2 @ p["w1"] + p["b1"][0], approximate=False) @ p["w2"] + p["b2"][0]
    return m + x1


# ----------------------------------- main -----------------------------------

if __name__ == "__main__":
    B, N, D = 2, 8, 32          # batch, seq, dim
    H, Dh = 2, 16               # num_head, head_dim
    F = 64                      # hidden_dim
    HDh = H * Dh

    ks = jax.random.split(jax.random.PRNGKey(0), 14)

    params = {
        "g1":  jnp.ones((1, D), jnp.float32),
        "be1": jnp.zeros((1, D), jnp.float32),
        "wq":  0.1 * jax.random.normal(ks[0], (D, HDh), jnp.float32),
        "bq":  0.01 * jax.random.normal(ks[1], (1, HDh), jnp.float32),
        "wk":  0.1 * jax.random.normal(ks[2], (D, HDh), jnp.float32),
        "bk":  0.01 * jax.random.normal(ks[3], (1, HDh), jnp.float32),
        "wv":  0.1 * jax.random.normal(ks[4], (D, HDh), jnp.float32),
        "bv":  0.01 * jax.random.normal(ks[5], (1, HDh), jnp.float32),
        "wo":  0.1 * jax.random.normal(ks[6], (HDh, D), jnp.float32),
        "bo":  0.01 * jax.random.normal(ks[7], (1, D), jnp.float32),
        "g2":  jnp.ones((1, D), jnp.float32),
        "be2": jnp.zeros((1, D), jnp.float32),
        "w1":  0.1 * jax.random.normal(ks[8], (D, F), jnp.float32),
        "b1":  0.01 * jax.random.normal(ks[9], (1, F), jnp.float32),
        "w2":  0.1 * jax.random.normal(ks[10], (F, D), jnp.float32),
        "b2":  0.01 * jax.random.normal(ks[11], (1, D), jnp.float32),
    }

    x = jax.random.normal(ks[12], (B, N, D), jnp.float32)
    # mask: keep everything in batch 0, mask the last 3 keys of batch 1.
    mask = jnp.ones((B, N), jnp.float32).at[1, -3:].set(0.0)

    prep = prepare_block_params(params)          # hoisted, one-time weight prep

    out = block_forward(x, mask, prep, num_head=H, head_dim=Dh)
    out = jax.block_until_ready(out)

    ref = block_reference(x, mask, params, num_head=H, head_dim=Dh)
    assert out.shape == (B, N, D) and out.dtype == jnp.float32
    # Tolerance accounts for bf16 MXU operands, approx reciprocal and tanh-GELU.
    assert jnp.allclose(out, ref, rtol=2e-2, atol=2e-2), (
        f"max abs err {jnp.max(jnp.abs(out - ref))}")

    print("KERNEL_OK")
</pallas_src>

<mosaic_0001>
module attributes {stable_mosaic.version = 11 : i64} {
  func.func @block_kernel(%arg0: i32, %arg1: memref<1x8x32xf32, #tpu.memory_space<vmem>>, %arg2: memref<1x1x8xf32, #tpu.memory_space<vmem>>, %arg3: memref<1x32xf32, #tpu.memory_space<vmem>>, %arg4: memref<1x32xf32, #tpu.memory_space<vmem>>, %arg5: memref<32x96xbf16, #tpu.memory_space<vmem>>, %arg6: memref<1x96xf32, #tpu.memory_space<vmem>>, %arg7: memref<32x32xbf16, #tpu.memory_space<vmem>>, %arg8: memref<1x32xf32, #tpu.memory_space<vmem>>, %arg9: memref<1x32xf32, #tpu.memory_space<vmem>>, %arg10: memref<1x32xf32, #tpu.memory_space<vmem>>, %arg11: memref<32x64xbf16, #tpu.memory_space<vmem>>, %arg12: memref<1x64xf32, #tpu.memory_space<vmem>>, %arg13: memref<64x32xbf16, #tpu.memory_space<vmem>>, %arg14: memref<1x32xf32, #tpu.memory_space<vmem>>, %arg15: memref<1x8x32xf32, #tpu.memory_space<vmem>>) attributes {dimension_semantics = [#tpu.dimension_semantics<parallel>], iteration_bounds = array<i64: 2>, scalar_prefetch = 0 : i64, scratch_operands = 0 : i64, tpu.core_type = #tpu.core_type<tc>, window_params = [{transform_indices = @transform_0, window_bounds = array<i64: 1, 8, 32>}, {transform_indices = @transform_1, window_bounds = array<i64: 1, 1, 8>}, {pipeline_mode = #tpu.pipeline_mode<synchronous>, transform_indices = @transform_2, window_bounds = array<i64: 1, 32>}, {pipeline_mode = #tpu.pipeline_mode<synchronous>, transform_indices = @transform_3, window_bounds = array<i64: 1, 32>}, {pipeline_mode = #tpu.pipeline_mode<synchronous>, transform_indices = @transform_4, window_bounds = array<i64: 32, 96>}, {pipeline_mode = #tpu.pipeline_mode<synchronous>, transform_indices = @transform_5, window_bounds = array<i64: 1, 96>}, {pipeline_mode = #tpu.pipeline_mode<synchronous>, transform_indices = @transform_6, window_bounds = array<i64: 32, 32>}, {pipeline_mode = #tpu.pipeline_mode<synchronous>, transform_indices = @transform_7, window_bounds = array<i64: 1, 32>}, {pipeline_mode = #tpu.pipeline_mode<synchronous>, transform_indices = @transform_8, window_bounds = array<i64: 1, 32>}, {pipeline_mode = #tpu.pipeline_mode<synchronous>, transform_indices = @transform_9, window_bounds = array<i64: 1, 32>}, {pipeline_mode = #tpu.pipeline_mode<synchronous>, transform_indices = @transform_10, window_bounds = array<i64: 32, 64>}, {pipeline_mode = #tpu.pipeline_mode<synchronous>, transform_indices = @transform_11, window_bounds = array<i64: 1, 64>}, {pipeline_mode = #tpu.pipeline_mode<synchronous>, transform_indices = @transform_12, window_bounds = array<i64: 64, 32>}, {pipeline_mode = #tpu.pipeline_mode<synchronous>, transform_indices = @transform_13, window_bounds = array<i64: 1, 32>}, {transform_indices = @transform_14, window_bounds = array<i64: 1, 8, 32>}]} {
    %c0 = arith.constant 0 : index
    %c0_0 = arith.constant 0 : index
    %c0_1 = arith.constant 0 : index
    %0 = vector.load %arg1[%c0, %c0_0, %c0_1] : memref<1x8x32xf32, #tpu.memory_space<vmem>>, vector<1x8x32xf32>
    %1 = vector.shape_cast %0 : vector<1x8x32xf32> to vector<8x32xf32>
    %c0_2 = arith.constant 0 : index
    %c0_3 = arith.constant 0 : index
    %2 = vector.load %arg3[%c0_2, %c0_3] : memref<1x32xf32, #tpu.memory_space<vmem>>, vector<1x32xf32>
    %c0_4 = arith.constant 0 : index
    %c0_5 = arith.constant 0 : index
    %3 = vector.load %arg4[%c0_4, %c0_5] : memref<1x32xf32, #tpu.memory_space<vmem>>, vector<1x32xf32>
    %cst = arith.constant dense<0.000000e+00> : vector<8xf32>
    %4 = vector.multi_reduction <add>, %1, %cst [1] : vector<8x32xf32> to vector<8xf32>
    %5 = vector.shape_cast %4 : vector<8xf32> to vector<8x1xf32>
    %cst_6 = arith.constant 3.200000e+01 : f32
    %6 = vector.broadcast %cst_6 : f32 to vector<8x1xf32>
    %7 = arith.divf %5, %6 : vector<8x1xf32>
    %8 = vector.broadcast %7 : vector<8x1xf32> to vector<8x32xf32>
    %9 = arith.subf %1, %8 : vector<8x32xf32>
    %10 = arith.mulf %9, %9 : vector<8x32xf32>
    %cst_7 = arith.constant dense<0.000000e+00> : vector<8xf32>
    %11 = vector.multi_reduction <add>, %10, %cst_7 [1] : vector<8x32xf32> to vector<8xf32>
    %12 = vector.shape_cast %11 : vector<8xf32> to vector<8x1xf32>
    %cst_8 = arith.constant 3.200000e+01 : f32
    %13 = vector.broadcast %cst_8 : f32 to vector<8x1xf32>
    %14 = arith.divf %12, %13 : vector<8x1xf32>
    %15 = vector.broadcast %7 : vector<8x1xf32> to vector<8x32xf32>
    %16 = arith.subf %1, %15 : vector<8x32xf32>
    %cst_9 = arith.constant 9.99999974E-6 : f32
    %17 = vector.broadcast %cst_9 : f32 to vector<8x1xf32>
    %18 = arith.addf %14, %17 : vector<8x1xf32>
    %19 = math.rsqrt %18 : vector<8x1xf32>
    %20 = vector.broadcast %19 : vector<8x1xf32> to vector<8x32xf32>
    %21 = arith.mulf %16, %20 : vector<8x32xf32>
    %22 = vector.broadcast %2 : vector<1x32xf32> to vector<8x32xf32>
    %23 = arith.mulf %21, %22 : vector<8x32xf32>
    %24 = vector.broadcast %3 : vector<1x32xf32> to vector<8x32xf32>
    %25 = arith.addf %23, %24 : vector<8x32xf32>
    %26 = arith.truncf %25 : vector<8x32xf32> to vector<8x32xbf16>
    %c0_10 = arith.constant 0 : index
    %c0_11 = arith.constant 0 : index
    %27 = vector.load %arg5[%c0_10, %c0_11] : memref<32x96xbf16, #tpu.memory_space<vmem>>, vector<32x96xbf16>
    %cst_12 = arith.constant dense<0.000000e+00> : vector<8x96xf32>
    %28 = tpu.matmul %26, %27, %cst_12 {dimension_numbers = #tpu.dot_dimension_numbers<[1], [0], [0], [1], [0, 0, 1, 1], [], []>} : vector<8x32xbf16>, vector<32x96xbf16>, vector<8x96xf32> -> vector<8x96xf32>
    %c0_13 = arith.constant 0 : index
    %c0_14 = arith.constant 0 : index
    %29 = vector.load %arg6[%c0_13, %c0_14] : memref<1x96xf32, #tpu.memory_space<vmem>>, vector<1x96xf32>
    %30 = vector.broadcast %29 : vector<1x96xf32> to vector<8x96xf32>
    %31 = arith.addf %28, %30 : vector<8x96xf32>
    %c0_15 = arith.constant 0 : index
    %c0_16 = arith.constant 0 : index
    %c0_17 = arith.constant 0 : index
    %32 = vector.load %arg2[%c0_15, %c0_16, %c0_17] : memref<1x1x8xf32, #tpu.memory_space<vmem>>, vector<1x1x8xf32>
    %cst_18 = arith.constant 1.000000e+00 : f32
    %33 = vector.broadcast %cst_18 : f32 to vector<1x1x8xf32>
    %34 = arith.subf %33, %32 : vector<1x1x8xf32>
    %cst_19 = arith.constant -1.000000e+06 : f32
    %35 = vector.broadcast %cst_19 : f32 to vector<1x1x8xf32>
    %36 = arith.mulf %35, %34 : vector<1x1x8xf32>
    %37 = tpu.transpose %31, [1, 0] : vector<8x96xf32> -> vector<96x8xf32>
    %38 = vector.shape_cast %37 : vector<96x8xf32> to vector<6x16x8xf32>
    %39 = vector.extract_strided_slice %38 {offsets = [0, 0, 0], sizes = [2, 16, 8], strides = [1, 1, 1]} : vector<6x16x8xf32> to vector<2x16x8xf32>
    %40 = tpu.transpose %39, [0, 2, 1] : vector<2x16x8xf32> -> vector<2x8x16xf32>
    %cst_20 = arith.constant 2.500000e-01 : f32
    %41 = vector.broadcast %cst_20 : f32 to vector<2x8x16xf32>
    %42 = arith.mulf %40, %41 : vector<2x8x16xf32>
    %43 = vector.extract_strided_slice %38 {offsets = [2, 0, 0], sizes = [2, 16, 8], strides = [1, 1, 1]} : vector<6x16x8xf32> to vector<2x16x8xf32>
    %44 = tpu.transpose %43, [0, 2, 1] : vector<2x16x8xf32> -> vector<2x8x16xf32>
    %45 = vector.extract_strided_slice %38 {offsets = [4, 0, 0], sizes = [2, 16, 8], strides = [1, 1, 1]} : vector<6x16x8xf32> to vector<2x16x8xf32>
    %46 = arith.truncf %42 : vector<2x8x16xf32> to vector<2x8x16xbf16>
    %47 = arith.truncf %44 : vector<2x8x16xf32> to vector<2x8x16xbf16>
    "tpu.trace_start"() <{level = 10 : i32, message = "hqd,hkd->hqk"}> : () -> ()
    %cst_21 = arith.constant dense<0.000000e+00> : vector<2x8x8xf32>
    %48 = tpu.matmul %46, %47, %cst_21 {dimension_numbers = #tpu.dot_dimension_numbers<[2], [2], [1], [1], [0, 0, 0, 1, 1, 1], [0], [0]>} : vector<2x8x16xbf16>, vector<2x8x16xbf16>, vector<2x8x8xf32> -> vector<2x8x8xf32>
    "tpu.trace_stop"() : () -> ()
    %49 = vector.broadcast %36 : vector<1x1x8xf32> to vector<2x8x8xf32>
    %50 = arith.addf %48, %49 : vector<2x8x8xf32>
    %cst_22 = arith.constant dense<0xFF800000> : vector<2x8xf32>
    %51 = vector.multi_reduction <maximumf>, %50, %cst_22 [2] : vector<2x8x8xf32> to vector<2x8xf32>
    %52 = vector.shape_cast %51 : vector<2x8xf32> to vector<2x8x1xf32>
    %53 = vector.broadcast %52 : vector<2x8x1xf32> to vector<2x8x8xf32>
    %54 = arith.subf %50, %53 : vector<2x8x8xf32>
    %55 = math.exp %54 : vector<2x8x8xf32>
    %cst_23 = arith.constant dense<0.000000e+00> : vector<2x8xf32>
    %56 = vector.multi_reduction <add>, %55, %cst_23 [2] : vector<2x8x8xf32> to vector<2x8xf32>
    %57 = tpu.reciprocal %56 {approx = true} : vector<2x8xf32> -> vector<2x8xf32>
    %58 = arith.truncf %45 : vector<2x16x8xf32> to vector<2x16x8xbf16>
    %59 = arith.truncf %55 : vector<2x8x8xf32> to vector<2x8x8xbf16>
    "tpu.trace_start"() <{level = 10 : i32, message = "hdk,hqk->hdq"}> : () -> ()
    %cst_24 = arith.constant dense<0.000000e+00> : vector<2x16x8xf32>
    %60 = tpu.matmul %58, %59, %cst_24 {dimension_numbers = #tpu.dot_dimension_numbers<[2], [2], [1], [1], [0, 0, 0, 1, 1, 1], [0], [0]>} : vector<2x16x8xbf16>, vector<2x8x8xbf16>, vector<2x16x8xf32> -> vector<2x16x8xf32>
    "tpu.trace_stop"() : () -> ()
    %61 = vector.shape_cast %57 : vector<2x8xf32> to vector<2x1x8xf32>
    %62 = vector.broadcast %61 : vector<2x1x8xf32> to vector<2x16x8xf32>
    %63 = arith.mulf %60, %62 : vector<2x16x8xf32>
    %64 = vector.shape_cast %63 : vector<2x16x8xf32> to vector<32x8xf32>
    %65 = tpu.transpose %64, [1, 0] : vector<32x8xf32> -> vector<8x32xf32>
    %66 = arith.truncf %65 : vector<8x32xf32> to vector<8x32xbf16>
    %c0_25 = arith.constant 0 : index
    %c0_26 = arith.constant 0 : index
    %67 = vector.load %arg7[%c0_25, %c0_26] : memref<32x32xbf16, #tpu.memory_space<vmem>>, vector<32x32xbf16>
    %cst_27 = arith.constant dense<0.000000e+00> : vector<8x32xf32>
    %68 = tpu.matmul %66, %67, %cst_27 {dimension_numbers = #tpu.dot_dimension_numbers<[1], [0], [0], [1], [0, 0, 1, 1], [], []>} : vector<8x32xbf16>, vector<32x32xbf16>, vector<8x32xf32> -> vector<8x32xf32>
    %c0_28 = arith.constant 0 : index
    %c0_29 = arith.constant 0 : index
    %69 = vector.load %arg8[%c0_28, %c0_29] : memref<1x32xf32, #tpu.memory_space<vmem>>, vector<1x32xf32>
    %70 = vector.broadcast %69 : vector<1x32xf32> to vector<8x32xf32>
    %71 = arith.addf %68, %70 : vector<8x32xf32>
    %72 = arith.addf %71, %1 : vector<8x32xf32>
    %c0_30 = arith.constant 0 : index
    %c0_31 = arith.constant 0 : index
    %73 = vector.load %arg9[%c0_30, %c0_31] : memref<1x32xf32, #tpu.memory_space<vmem>>, vector<1x32xf32>
    %c0_32 = arith.constant 0 : index
    %c0_33 = arith.constant 0 : index
    %74 = vector.load %arg10[%c0_32, %c0_33] : memref<1x32xf32, #tpu.memory_space<vmem>>, vector<1x32xf32>
    %cst_34 = arith.constant dense<0.000000e+00> : vector<8xf32>
    %75 = vector.multi_reduction <add>, %72, %cst_34 [1] : vector<8x32xf32> to vector<8xf32>
    %76 = vector.shape_cast %75 : vector<8xf32> to vector<8x1xf32>
    %cst_35 = arith.constant 3.200000e+01 : f32
    %77 = vector.broadcast %cst_35 : f32 to vector<8x1xf32>
    %78 = arith.divf %76, %77 : vector<8x1xf32>
    %79 = vector.broadcast %78 : vector<8x1xf32> to vector<8x32xf32>
    %80 = arith.subf %72, %79 : vector<8x32xf32>
    %81 = arith.mulf %80, %80 : vector<8x32xf32>
    %cst_36 = arith.constant dense<0.000000e+00> : vector<8xf32>
    %82 = vector.multi_reduction <add>, %81, %cst_36 [1] : vector<8x32xf32> to vector<8xf32>
    %83 = vector.shape_cast %82 : vector<8xf32> to vector<8x1xf32>
    %cst_37 = arith.constant 3.200000e+01 : f32
    %84 = vector.broadcast %cst_37 : f32 to vector<8x1xf32>
    %85 = arith.divf %83, %84 : vector<8x1xf32>
    %86 = vector.broadcast %78 : vector<8x1xf32> to vector<8x32xf32>
    %87 = arith.subf %72, %86 : vector<8x32xf32>
    %cst_38 = arith.constant 9.99999974E-6 : f32
    %88 = vector.broadcast %cst_38 : f32 to vector<8x1xf32>
    %89 = arith.addf %85, %88 : vector<8x1xf32>
    %90 = math.rsqrt %89 : vector<8x1xf32>
    %91 = vector.broadcast %90 : vector<8x1xf32> to vector<8x32xf32>
    %92 = arith.mulf %87, %91 : vector<8x32xf32>
    %93 = vector.broadcast %73 : vector<1x32xf32> to vector<8x32xf32>
    %94 = arith.mulf %92, %93 : vector<8x32xf32>
    %95 = vector.broadcast %74 : vector<1x32xf32> to vector<8x32xf32>
    %96 = arith.addf %94, %95 : vector<8x32xf32>
    %97 = arith.truncf %96 : vector<8x32xf32> to vector<8x32xbf16>
    %c0_39 = arith.constant 0 : index
    %c0_40 = arith.constant 0 : index
    %98 = vector.load %arg11[%c0_39, %c0_40] : memref<32x64xbf16, #tpu.memory_space<vmem>>, vector<32x64xbf16>
    %cst_41 = arith.constant dense<0.000000e+00> : vector<8x64xf32>
    %99 = tpu.matmul %97, %98, %cst_41 {dimension_numbers = #tpu.dot_dimension_numbers<[1], [0], [0], [1], [0, 0, 1, 1], [], []>} : vector<8x32xbf16>, vector<32x64xbf16>, vector<8x64xf32> -> vector<8x64xf32>
    %c0_42 = arith.constant 0 : index
    %c0_43 = arith.constant 0 : index
    %100 = vector.load %arg12[%c0_42, %c0_43] : memref<1x64xf32, #tpu.memory_space<vmem>>, vector<1x64xf32>
    %101 = vector.broadcast %100 : vector<1x64xf32> to vector<8x64xf32>
    %102 = arith.addf %99, %101 : vector<8x64xf32>
    %cst_44 = arith.constant 5.000000e-01 : f32
    %103 = vector.broadcast %cst_44 : f32 to vector<8x64xf32>
    %104 = arith.mulf %103, %102 : vector<8x64xf32>
    %cst_45 = arith.constant 4.471500e-02 : f32
    %105 = vector.broadcast %cst_45 : f32 to vector<8x64xf32>
    %106 = arith.mulf %105, %102 : vector<8x64xf32>
    %107 = arith.mulf %106, %102 : vector<8x64xf32>
    %108 = arith.mulf %107, %102 : vector<8x64xf32>
    %109 = arith.addf %102, %108 : vector<8x64xf32>
    %cst_46 = arith.constant 0.797884583 : f32
    %110 = vector.broadcast %cst_46 : f32 to vector<8x64xf32>
    %111 = arith.mulf %110, %109 : vector<8x64xf32>
    %112 = math.tanh %111 : vector<8x64xf32>
    %cst_47 = arith.constant 1.000000e+00 : f32
    %113 = vector.broadcast %cst_47 : f32 to vector<8x64xf32>
    %114 = arith.addf %113, %112 : vector<8x64xf32>
    %115 = arith.mulf %104, %114 : vector<8x64xf32>
    %116 = arith.truncf %115 : vector<8x64xf32> to vector<8x64xbf16>
    %c0_48 = arith.constant 0 : index
    %c0_49 = arith.constant 0 : index
    %117 = vector.load %arg13[%c0_48, %c0_49] : memref<64x32xbf16, #tpu.memory_space<vmem>>, vector<64x32xbf16>
    %cst_50 = arith.constant dense<0.000000e+00> : vector<8x32xf32>
    %118 = tpu.matmul %116, %117, %cst_50 {dimension_numbers = #tpu.dot_dimension_numbers<[1], [0], [0], [1], [0, 0, 1, 1], [], []>} : vector<8x64xbf16>, vector<64x32xbf16>, vector<8x32xf32> -> vector<8x32xf32>
    %c0_51 = arith.constant 0 : index
    %c0_52 = arith.constant 0 : index
    %119 = vector.load %arg14[%c0_51, %c0_52] : memref<1x32xf32, #tpu.memory_space<vmem>>, vector<1x32xf32>
    %120 = vector.broadcast %119 : vector<1x32xf32> to vector<8x32xf32>
    %121 = arith.addf %118, %120 : vector<8x32xf32>
    %122 = arith.addf %121, %72 : vector<8x32xf32>
    %123 = vector.shape_cast %122 : vector<8x32xf32> to vector<1x8x32xf32>
    %c0_53 = arith.constant 0 : index
    %c0_54 = arith.constant 0 : index
    %c0_55 = arith.constant 0 : index
    %124 = vector.load %arg15[%c0_53, %c0_54, %c0_55] : memref<1x8x32xf32, #tpu.memory_space<vmem>>, vector<1x8x32xf32>
    tpu.vector_store %arg15[%c0_53, %c0_54, %c0_55], %123 {strides = array<i32>} : memref<1x8x32xf32, #tpu.memory_space<vmem>>, vector<1x8x32xf32>,
    return
  }
  func.func @transform_0(%arg0: i32) -> (i32, i32, i32) {
    %c0_i32 = arith.constant 0 : i32
    %c0_i32_0 = arith.constant 0 : i32
    %c0_i32_1 = arith.constant 0 : i32
    return %arg0, %c0_i32, %c0_i32_0 : i32, i32, i32
  }
  func.func @transform_1(%arg0: i32) -> (i32, i32, i32) {
    %c0_i32 = arith.constant 0 : i32
    %c0_i32_0 = arith.constant 0 : i32
    %c0_i32_1 = arith.constant 0 : i32
    return %arg0, %c0_i32, %c0_i32_0 : i32, i32, i32
  }
  func.func @transform_2(%arg0: i32) -> (i32, i32) {
    %c0_i32 = arith.constant 0 : i32
    %c0_i32_0 = arith.constant 0 : i32
    %c0_i32_1 = arith.constant 0 : i32
    return %c0_i32, %c0_i32_0 : i32, i32
  }
  func.func @transform_3(%arg0: i32) -> (i32, i32) {
    %c0_i32 = arith.constant 0 : i32
    %c0_i32_0 = arith.constant 0 : i32
    %c0_i32_1 = arith.constant 0 : i32
    return %c0_i32, %c0_i32_0 : i32, i32
  }
  func.func @transform_4(%arg0: i32) -> (i32, i32) {
    %c0_i32 = arith.constant 0 : i32
    %c0_i32_0 = arith.constant 0 : i32
    %c0_i32_1 = arith.constant 0 : i32
    return %c0_i32, %c0_i32_0 : i32, i32
  }
  func.func @transform_5(%arg0: i32) -> (i32, i32) {
    %c0_i32 = arith.constant 0 : i32
    %c0_i32_0 = arith.constant 0 : i32
    %c0_i32_1 = arith.constant 0 : i32
    return %c0_i32, %c0_i32_0 : i32, i32
  }
  func.func @transform_6(%arg0: i32) -> (i32, i32) {
    %c0_i32 = arith.constant 0 : i32
    %c0_i32_0 = arith.constant 0 : i32
    %c0_i32_1 = arith.constant 0 : i32
    return %c0_i32, %c0_i32_0 : i32, i32
  }
  func.func @transform_7(%arg0: i32) -> (i32, i32) {
    %c0_i32 = arith.constant 0 : i32
    %c0_i32_0 = arith.constant 0 : i32
    %c0_i32_1 = arith.constant 0 : i32
    return %c0_i32, %c0_i32_0 : i32, i32
  }
  func.func @transform_8(%arg0: i32) -> (i32, i32) {
    %c0_i32 = arith.constant 0 : i32
    %c0_i32_0 = arith.constant 0 : i32
    %c0_i32_1 = arith.constant 0 : i32
    return %c0_i32, %c0_i32_0 : i32, i32
  }
  func.func @transform_9(%arg0: i32) -> (i32, i32) {
    %c0_i32 = arith.constant 0 : i32
    %c0_i32_0 = arith.constant 0 : i32
    %c0_i32_1 = arith.constant 0 : i32
    return %c0_i32, %c0_i32_0 : i32, i32
  }
  func.func @transform_10(%arg0: i32) -> (i32, i32) {
    %c0_i32 = arith.constant 0 : i32
    %c0_i32_0 = arith.constant 0 : i32
    %c0_i32_1 = arith.constant 0 : i32
    return %c0_i32, %c0_i32_0 : i32, i32
  }
  func.func @transform_11(%arg0: i32) -> (i32, i32) {
    %c0_i32 = arith.constant 0 : i32
    %c0_i32_0 = arith.constant 0 : i32
    %c0_i32_1 = arith.constant 0 : i32
    return %c0_i32, %c0_i32_0 : i32, i32
  }
  func.func @transform_12(%arg0: i32) -> (i32, i32) {
    %c0_i32 = arith.constant 0 : i32
    %c0_i32_0 = arith.constant 0 : i32
    %c0_i32_1 = arith.constant 0 : i32
    return %c0_i32, %c0_i32_0 : i32, i32
  }
  func.func @transform_13(%arg0: i32) -> (i32, i32) {
    %c0_i32 = arith.constant 0 : i32
    %c0_i32_0 = arith.constant 0 : i32
    %c0_i32_1 = arith.constant 0 : i32
    return %c0_i32, %c0_i32_0 : i32, i32
  }
  func.func @transform_14(%arg0: i32) -> (i32, i32, i32) {
    %c0_i32 = arith.constant 0 : i32
    %c0_i32_0 = arith.constant 0 : i32
    %c0_i32_1 = arith.constant 0 : i32
    return %arg0, %c0_i32, %c0_i32_0 : i32, i32, i32
  }
}

</mosaic_0001>

<bundles_post_ra>
// kernel: tpu_custom_call.1
= control target key start
LH: loop header
LB: loop body
LE: loop exit
PB: predicated region body
PF: predicated region fallthrough
CT: control target
= control target key end

     0   :  { %s2513_s0 = inlined_call_operand.vmem [shape: f32[2,8,32], index: 0, kind: input, shape index: {}]   ;;  %s2514_s1 = inlined_call_operand.hbm [shape: f32[2,1,8], index: 1, kind: input, shape index: {}]   ;;  %s2515_s2 = inlined_call_operand.hbm [shape: f32[1,32], index: 2, kind: input, shape index: {}]   ;;  %s2516_s3 = inlined_call_operand.hbm [shape: f32[1,32], index: 3, kind: input, shape index: {}]   ;;  %s2517_s4 = inlined_call_operand.vmem [shape: bf16[32,96], index: 4, kind: input, shape index: {}]   ;;  %s2518_s5 = inlined_call_operand.hbm [shape: f32[1,96], index: 5, kind: input, shape index: {}]   ;;  %s2519_s6 = inlined_call_operand.vmem [shape: bf16[32,32], index: 6, kind: input, shape index: {}]   ;;  %s2520_s7 = inlined_call_operand.hbm [shape: f32[1,32], index: 7, kind: input, shape index: {}]   ;;  %s2521_s8 = inlined_call_operand.hbm [shape: f32[1,32], index: 8, kind: input, shape index: {}]   ;;  %s2522_s9 = inlined_call_operand.hbm [shape: f32[1,32], index: 9, kind: input, shape index: {}]   ;;  %s2523_s10 = inlined_call_operand.vmem [shape: bf16[32,64], index: 10, kind: input, shape index: {}]   ;;  %s2524_s11 = inlined_call_operand.vmem [shape: f32[1,64], index: 11, kind: input, shape index: {}]   ;;  %s2525_s12 = inlined_call_operand.vmem [shape: bf16[64,32], index: 12, kind: input, shape index: {}]   ;;  %s2526_s13 = inlined_call_operand.vmem [shape: f32[1,32], index: 13, kind: input, shape index: {}]   ;;  %s2527_s14 = inlined_call_operand.hbm [shape: f32[2,8,32], index: 14, kind: output, shape index: {}]  }
   0x1   :  { %2534 = sst [smem:[#allocation22_spill]] %s2515_s2 }
   0x2   :  { %2535 = sst [smem:[#allocation23_spill]] %s2516_s3 }
   0x3   :  { %2536 = sst [smem:[#allocation24_spill]] %s2518_s5 }
   0x4   :  { %2537 = sst [smem:[#allocation25_spill]] %s2520_s7 }
   0x5   :  { %2538 = sst [smem:[#allocation26_spill]] %s2521_s8 }
   0x6   :  { %2539 = sst [smem:[#allocation27_spill]] %s2522_s9 }
   0x7   :  { %2540 = sst [smem:[#allocation28_spill]] %s2527_s14 }
   0x8   :  { %19 = vsyncpa [#allocation3], 0 }
   0x9   :  { %21 = vsyncpa [#allocation3 + $0x1], 0 }
   0xa   :  { %22 = vsyncpa [#allocation6], 0 }
   0xb   :  { %23 = vsyncpa [#allocation9], 0 }
   0xc   :  { %24 = vsyncpa [#allocation12], 0 }
   0xd   :  { %25 = vsyncpa [#allocation4], 0 }
   0xe   :  { %27 = vsyncpa [#allocation4 + $0x1], 0  ;;  %s2156_s29 = smov 0   ;;  %s2158_s30 = smov 0  }
   0xf   :  { %s2160_s15 = smov 0   ;;  %s2162_s16 = smov 0  }
  0x10 LB: > { %2541 = sst [smem:[#allocation20_spill]] %s2065_s15  ;;  %s2071_s17 = smov [#allocation5]   ;;  %s2069_s16 = sphi %s2162_s16, %s2574_s16   ;;  %s2065_s15 = sphi %s2160_s15, %s2571_s15   ;;  %s2061_s30 = sphi %s2158_s30, %s2573_s30   ;;  %s2057_s29 = sphi %s2156_s29, %s2572_s29  }
  0x11   : > { %s381_s18 = sshll.u32 %s2071_s17, 4  ;;  %s2177_s19 = sadd.s32 4294967295, %s2069_s16   ;;  %s382_s18 = int_to_ptr.vmem [resolvable:$true] %s381_s18 }
  0x12   : > { %p1537_p0 = scmp.ge.s32.totalorder %s2069_s16, 1  ;;  %p2529_p1 = scmp.eq.s32.totalorder %s2177_s19, 0 }
  0x13   : > { %p368_p2 = scmp.lt.s32.totalorder %s2069_s16, 3  ;;  %s2072_s21 = smov [#allocation8]  }
  0x14   : > { %s406_s22 = sshll.u32 %s2072_s21, 4  ;;  %s2073_s23 = smov [#allocation11]   ;;  %s2189_s22 = int_to_ptr.vmem [resolvable:$true] %s406_s22 }
  0x15   : > { %p2182_p3 = pnand %p1537_p0, %p368_p2  ;;  %s431_s24 = sshll.u32 %s2073_s23, 4  ;;  %s2197_s24 = int_to_ptr.vmem [resolvable:$true] %s431_s24 }
  0x16   : > { %s2074_s26 = smov [#allocation7]   ;;  %s1820_s17 = scalar_lea.vmem %s382_s18, 16 }
  0x17   : > { %s2542_s20 = scalar_select %p2182_p3, 1, 0 }
  0x18   : > { %p1695_p5 = pneg %p2182_p3  ;;  %s2199_s27 = sshll.u32 %s2074_s26, 4  ;;  %s393_s27 = int_to_ptr.vmem [resolvable:$true] %s2199_s27 }
  0x19   : > { %p1821_p8 = scmp.ne.s32.totalorder %s382_s18, %s1820_s17  ;;  %s1827_s21 = scalar_lea.vmem %s382_s18, 32 }
  0x1a   : > { %p2193_p6 = pnand %p1695_p5, %p2529_p1  ;;  %p1828_p11 = scmp.lt.s32.totalorder %s382_s18, %s382_s18 }
  0x1b   : > { %p1829_p12 = scmp.lt.s32.totalorder %s1827_s21, %s1820_s17 }
  0x1c   : > { %p2203_p7 = pneg %p2193_p6 }
  0x1d   : > { %p1830_p13 = por %p1829_p12, %p1828_p11 }
  0x1e   : > { %p1823_p9 = pnand %p1821_p8, %p2203_p7 }
  0x20   : > { %p1824_p10 = pneg %p1823_p9 }
  0x22   : > { %p1831_p0 = pnand %p1830_p13, %p1824_p10 }
  0x24   : > { %1834 = shalt.err (!%p1831_p0)
}
  0x25   : > { %s2545_s2 = sld [smem:[#allocation22_spill]]  ;;  %s1846_s14 = scalar_lea.vmem %s2189_s22, 16 }
  0x26   : > { %p1847_p2 = scmp.ne.s32.totalorder %s2189_s22, %s1846_s14  ;;  %s1853_s17 = scalar_lea.vmem %s2189_s22, 32 }
  0x27   : > { %p1854_p9 = scmp.lt.s32.totalorder %s2189_s22, %s2189_s22  ;;  %p1855_p10 = scmp.lt.s32.totalorder %s1853_s17, %s1846_s14 }
  0x28   : > { %p1849_p5 = pnand %p1847_p2, %p2203_p7 }
  0x29   : > { %p1856_p11 = por %p1855_p10, %p1854_p9 }
  0x2a   : > { %p1850_p8 = pneg %p1849_p5 }
  0x2b   : > { %1698 = dma.hbm_to_vmem [thread:$0]  (!%p2193_p6), %s2545_s2, 16, %s382_s18, [#allocation6]  }
  0x2c   : > { %p1857_p12 = pnand %p1856_p11, %p1850_p8 }
  0x2e   : > { %1860 = shalt.err (!%p1857_p12)
}
  0x2f   : > { %s2546_s5 = sld [smem:[#allocation24_spill]]  ;;  %s1872_s18 = scalar_lea.vmem %s2197_s24, 16 }
  0x30   : > { %p1873_p13 = scmp.ne.s32.totalorder %s2197_s24, %s1872_s18  ;;  %s1879_s14 = scalar_lea.vmem %s2197_s24, 32 }
  0x31   : > { %p1880_p5 = scmp.lt.s32.totalorder %s2197_s24, %s2197_s24  ;;  %p1881_p8 = scmp.lt.s32.totalorder %s1879_s14, %s1872_s18 }
  0x32   : > { %p1875_p0 = pnand %p1873_p13, %p2203_p7 }
  0x33   : > { %p1882_p9 = por %p1881_p8, %p1880_p5 }
  0x34   : > { %p1876_p2 = pneg %p1875_p0 }
  0x35   : > { %1704 = dma.hbm_to_vmem [thread:$0]  (!%p2193_p6), %s2546_s5, 16, %s2189_s22, [#allocation9]  }
  0x36   : > { %p1883_p10 = pnand %p1882_p9, %p1876_p2 }
  0x38   : > { %1886 = shalt.err (!%p1883_p10)
}
  0x39   : > { %s2547_s8 = sld [smem:[#allocation26_spill]]  ;;  %s2075_s22 = smov [#allocation10]  }
  0x3a   : > { %s420_s21 = sshll.u32 %s2075_s22, 4  ;;  %s1898_s23 = scalar_lea.vmem %s393_s27, 16  ;;  %s421_s21 = int_to_ptr.vmem [resolvable:$true] %s420_s21 }
  0x3b   : > { %p1899_p11 = scmp.ne.s32.totalorder %s393_s27, %s1898_s23  ;;  %s1905_s18 = scalar_lea.vmem %s393_s27, 32 }
  0x3c   : > { %p1906_p0 = scmp.lt.s32.totalorder %s393_s27, %s393_s27  ;;  %p1907_p2 = scmp.lt.s32.totalorder %s1905_s18, %s1898_s23 }
  0x3d   : > { %p1901_p12 = pnand %p1899_p11, %p2203_p7 }
  0x3e   : > { %p1908_p5 = por %p1907_p2, %p1906_p0 }
  0x3f   : > { %1710 = dma.hbm_to_vmem [thread:$0]  (!%p2193_p6), %s2547_s8, 16, %s2197_s24, [#allocation12]  }
  0x40   : > { %p1902_p13 = pneg %p1901_p12 }
  0x42   : > { %p1909_p8 = pnand %p1908_p5, %p1902_p13 }
  0x44   : > { %1912 = shalt.err (!%p1909_p8)
}
  0x45   : > { %s2548_s3 = sld [smem:[#allocation23_spill]]  ;;  %s1924_s24 = scalar_lea.vmem %s421_s21, 16 }
  0x46   : > { %p1925_p9 = scmp.ne.s32.totalorder %s421_s21, %s1924_s24  ;;  %s1931_s17 = scalar_lea.vmem %s421_s21, 32 }
  0x47   : > { %p1932_p12 = scmp.lt.s32.totalorder %s421_s21, %s421_s21  ;;  %p1933_p4 = scmp.lt.s32.totalorder %s1931_s17, %s1924_s24 }
  0x48   : > { %p1927_p10 = pnand %p1925_p9, %p2203_p7 }
  0x49   : > { %p1934_p1 = por %p1933_p4, %p1932_p12 }
  0x4a   : > { %p1928_p11 = pneg %p1927_p10 }
  0x4b   : > { %1701 = dma.hbm_to_vmem [thread:$0]  (!%p2193_p6), %s2548_s3, 16, %s393_s27, [#allocation6]  }
  0x4c   : > { %p1935_p0 = pnand %p1934_p1, %p1928_p11 }
  0x4e   : > { %1938 = shalt.err (!%p1935_p0)
}
  0x4f   : > { %s2549_s7 = sld [smem:[#allocation25_spill]]  ;;  %s2076_s27 = smov [#allocation13]  }
  0x50   : > { %s442_s18 = sshll.u32 %s2076_s27, 4  ;;  %s443_s18 = int_to_ptr.vmem [resolvable:$true] %s442_s18 }
  0x51   : > { %s1950_s14 = scalar_lea.vmem %s443_s18, 16  ;;  %s1957_s26 = scalar_lea.vmem %s443_s18, 32 }
  0x52   : > { %p1951_p13 = scmp.ne.s32.totalorder %s443_s18, %s1950_s14  ;;  %p1958_p8 = scmp.lt.s32.totalorder %s443_s18, %s443_s18 }
  0x53   : > { %p1959_p4 = scmp.lt.s32.totalorder %s1957_s26, %s1950_s14 }
  0x54   : > { %p1953_p2 = pnand %p1951_p13, %p2203_p7 }
  0x55   : > { %1707 = dma.hbm_to_vmem [thread:$0]  (!%p2193_p6), %s2549_s7, 16, %s421_s21, [#allocation9]  }
  0x56   : > { %p1954_p5 = pneg %p1953_p2  ;;  %p1960_p1 = por %p1959_p4, %p1958_p8 }
  0x58   : > { %p1961_p9 = pnand %p1960_p1, %p1954_p5 }
  0x5a   : > { %1964 = shalt.err (!%p1961_p9)
}
  0x5b   : > { %s2550_s9 = sld [smem:[#allocation27_spill]]  ;;  %s1536_s28 = sadd.s32 4294967294, %s2069_s16  }
  0x5c   : > { %s2264_s25 = sadd.s32 1, %s2069_s16   ;;  %s66_s22 = sadd.s32 1, %s2065_s15 }
  0x5d   : > { %s63_s21 = ssub.s32 %s2069_s16, %s2264_s25  ;;  %p73_p10 = scmp.ne.s32.totalorder %s2065_s15, %s2061_s30 }
  0x5e   : > { %p64_p7 = scmp.eq.s32.totalorder %s63_s21, 0  ;;  %p74_p11 = scmp.eq.s32.totalorder %s2069_s16, 0 }
  0x5f   : > { %p79_p12 = scmp.ne.s32.totalorder %s2061_s30, %s2057_s29  ;;  %p2553_p13 = scmp.eq.s32.totalorder %s2177_s19, 0 }
  0x60   : > { %s2275_s23 = scalar_select %p64_p7, %s2065_s15, %s66_s22  }
  0x61   : > { %1713 = dma.hbm_to_vmem [thread:$0]  (!%p2193_p6), %s2550_s9, 16, %s443_s18, [#allocation12]  }
  0x62   : > { %2551 = sst [smem:[#allocation21_spill]] %s2275_s23  ;;  %p2277_p0 = por %p74_p11, %p73_p10 }
  0x63   : > { %p2283_p6 = por %p2553_p13, %p79_p12  ;;  %p355_p2 = scmp.eq.s32.totalorder %s2177_s19, 1 }
  0x64   : > { %p361_p5 = scmp.eq.s32.totalorder %s1536_s28, 1  ;;  %p1728_p8 = scmp.lt.s32.totalorder %s2069_s16, 2 }
  0x65   : > { %s2554_s18 = scalar_select %p2283_p6, 1, 0 }
  0x66   : > { %s472_s14 = sand.u32 1, %s2065_s15   ;;  %p2290_p4 = por %p355_p2, %p73_p10 }
  0x67   : > { %p2294_p1 = por %p361_p5, %p79_p12  ;;  %s1545_s17 = sshll.u32 %s2069_s16, 4 }
  0x68   : > { %s2555_s26 = scalar_select %p2290_p4, 1, 0 }
  0x69   : > { %s2556_s24 = scalar_select %p2294_p1, 1, 0 }
  0x6a   : > { %s475_s21 = scalar_lea.vmem [#allocation2], %s472_s14  ;;  %s2302_s5 = scalar_lea.hbm %s2514_s1, %s1545_s17 }
  0x6b   : > { %s482_s22 = sshll.u32 %s475_s21, 4  ;;  %p2306_p9 = pnand %p1728_p8, %p2277_p0  ;;  %s483_s22 = int_to_ptr.vmem [resolvable:$true] %s482_s22 }
  0x6c   : > { %s473_s7 = scalar_lea.sflag [#allocation3], %s472_s14  ;;  %s1965_s8 = scalar_lea.hbm %s2302_s5, 16 }
  0x6d   : > { %p1966_p7 = scmp.ne.s32.totalorder %s2302_s5, %s1965_s8  ;;  %p1967_p10 = pneg %p2306_p9 }
  0x6e   : > { %s1970_s17 = scalar_lea.hbm %s2514_s1, 32  ;;  %p1971_p13 = scmp.lt.s32.totalorder %s2302_s5, %s2514_s1 }
  0x6f   : > { %p1968_p11 = pnand %p1967_p10, %p1966_p7  ;;  %p1972_p0 = scmp.lt.s32.totalorder %s1970_s17, %s1965_s8 }
  0x71   : > { %p1969_p12 = pneg %p1968_p11  ;;  %p1973_p2 = por %p1972_p0, %p1971_p13 }
  0x73   : > { %p1974_p5 = pnand %p1973_p2, %p1969_p12 }
  0x75   : > { %1977 = shalt.err (!%p1974_p5)
}
  0x76   : > { %s1978_s27 = scalar_lea.vmem %s483_s22, 16  ;;  %s2077_s14 = smov [#allocation2]  }
  0x77   : > { %p1979_p8 = scmp.ne.s32.totalorder %s483_s22, %s1978_s27  ;;  %s1983_s23 = sshll.u32 %s2077_s14, 4  ;;  %s1984_s23 = int_to_ptr.vmem [resolvable:$false] %s1983_s23 }
  0x78   : > { %s1985_s15 = scalar_lea.vmem %s1984_s23, 32  ;;  %p1986_p7 = scmp.lt.s32.totalorder %s483_s22, %s1984_s23 }
  0x79   : > { %p1981_p1 = pnand %p1979_p8, %p1967_p10  ;;  %p1987_p11 = scmp.lt.s32.totalorder %s1985_s15, %s1978_s27 }
  0x7b   : > { %p1982_p4 = pneg %p1981_p1  ;;  %p1988_p6 = por %p1987_p11, %p1986_p7 }
  0x7d   : > { %p1989_p3 = pnand %p1988_p6, %p1982_p4 }
  0x7f   : > { %1992 = shalt.err (!%p1989_p3)
}
  0x80   : > { %1717 = dma.hbm_to_vmem [thread:$0]  (!%p2306_p9), %s2302_s5, 16, %s483_s22, %s473_s7  }
  0x81   : > { %p2558_p12 = scmp.ne.s32.totalorder %s2542_s20, 0 }
  0x82   : > { %s2327_s8 = sand.u32 (!%p2558_p12), 1, %s2061_s30   ;;  %p2559_p1 = scmp.ne.s32.totalorder (!%p2558_p12), %s2554_s18, 0 }
  0x83   : > { %491 = sbr.rel (%p2558_p12) target bundleno = 2573 (0xa0d), region = 76  ;;  %s494_s9 = scalar_lea.sflag (!%p2558_p12), [#allocation3], %s2327_s8 }
  0x84   : > { %s496_s2 = scalar_lea.vmem (!%p2558_p12), [#allocation2], %s2327_s8 }
  0x88   : > { %2036 = dma.done.wait (%p2559_p1), %s494_s9, 16  }
  0x89   : > { %2038 = vsyncadd (%p2559_p1), %s494_s9, 4294967280  ;;  %p2560_p3 = scmp.eq.s32.totalorder %s2177_s19, 0 }
  0x8b   : > { %2040 = dma.done.wait (%p2560_p3), [#allocation6], 32   ;;  %p2561_p6 = pmov %p2560_p3 }
  0x8c   : > { %p2562_p4 = pmov %p2560_p3 }
  0x8d   : > { %2042 = vsyncadd (%p2561_p6), [#allocation6], 4294967264 }
  0x8e   : > { %2044 = dma.done.wait (%p2562_p4), [#allocation9], 32   ;;  %p2563_p9 = pmov %p2560_p3 }
  0x8f   : > { %p2564_p10 = pmov %p2560_p3 }
  0x90   : > { %2046 = vsyncadd (%p2563_p9), [#allocation9], 4294967264 }
  0x91   : > { %2048 = dma.done.wait (%p2564_p10), [#allocation12], 32   ;;  %p2565_p13 = pmov %p2560_p3 }
  0x92   : > { %p568_p0 = scmp.lt.s32.totalorder %s2177_s19, 1  ;;  %vm576_vm0 = vcmask 261120   ;;  %v1785_v7 = vld [vmem:[%s2517_s4 + $0x8] sm:$0xff]   ;;  %v2078_v8 = vmov 0.0   ;;  %vm2079_vm1 = vmmov 0   ;;  %v1786_v9 = vld [vmem:[%s2517_s4] sm:$0xff]   ;;  %v842_v54 = vlaneseq }
  0x93   : > { %2050 = vsyncadd (%p2565_p13), [#allocation12], 4294967264  ;;  %1607 = vmatprep.subr.bf16.mxu0 %v2078_v8  ;;  %1611 = vmatprep.mubr.msk.bf16.mxu0 %vm2079_vm1, %v2078_v8  ;;  %v1555_v14 = vld [vmem:[#allocation5] ss:$0 sm:$0xff]  ;;  %v1556_v16 = vld [vmem:[#allocation7] ss:$0 sm:$0xff] }
  0x94   : > { %s569_s5 = scalar_select %p568_p0, %s2177_s19, 1  ;;  %1608 = vmatpush3.bf16.msra.mxu0 %v1785_v7  ;;  %1615 = vmatprep.subr.bf16.mxu1 %v2078_v8  ;;  %v1557_v20 = vld [vmem:[#allocation8] ss:$0 sm:$0xff]  ;;  %vm847_vm2 = vcmask 130048   ;;  %v672_v55 = vld [vmem:[%s496_s2] sm:$0x1] }
  0x95   : > { %1609 = vmatprep.subr.bf16.mxu0 %v2078_v8  ;;  %1617 = vmatprep.mubr.msk.bf16.mxu1 %vm2079_vm1, %v2078_v8  ;;  %v673_v56 = vsub.f32 1.0, %v672_v55  ;;  %v843_v57 = vshrl.u32 %v842_v54, 7  ;;  %vm940_vm3 = vcmask 64512   ;;  %vm1340_vm4 = vcmask 523264   ;;  %s1553_s14 = sshll.u32 %s2327_s8, 3  ;;  %s2566_s18 = sld [smem:[#allocation28_spill]] }
  0x96   : > { %s1554_s7 = sshll.u32 %s569_s5, 3  ;;  %s1582_s5 = sshll.u32 %s2177_s19, 7 }
  0x97   : > { %s571_s23 = scalar_lea.vmem %s2513_s0, %s1554_s7  ;;  %v674_v58 = vmul.f32 -1000000.0, %v673_v56  ;;  %v844_v59 = vsub.s32 0, %v843_v57  ;;  %s567_s7 = scalar_lea.vmem [#allocation14], %s1553_s14 }
  0x98   : > { %v2352_v0 = vld [vmem:[%s571_s23] sm:$0xff]  ;;  %1610 = vmatpush3.bf16.msra.mxu0 %v1786_v9  ;;  %s1400_s15 = sshll.u32 %s567_s7, 4  ;;  %s1387_s19 = scalar_lea.sflag [#allocation4], %s2327_s8  ;;  %s2471_s15 = int_to_ptr.vmem [resolvable:$true] %s1400_s15 }
  0x99   : > { %v577_v1 = vsel %vm576_vm0, %v2352_v0, 0.0  ;;  %1621 = vmatprep.subr.bf16.mxu0 %v2078_v8  ;;  %v845_v60 = vrot.slane %v674_v58, %v844_v59  ;;  %s1993_s28 = scalar_lea.vmem %s2471_s15, 128  ;;  %p2567_p5 = scmp.ne.s32.totalorder %s2555_s26, 0 }
  0x9a   : > { %578 = vadd.xlane.f32.xlu0 %v577_v1  ;;  %p1994_p2 = scmp.ne.s32.totalorder %s2471_s15, %s1993_s28  ;;  %s2080_s3 = smov [#allocation14]  }
  0x9b   : > { %s2469_s22 = scalar_lea.hbm %s2566_s18, %s1582_s5  ;;  %s1997_s17 = sshll.u32 %s2080_s3, 4  ;;  %s1998_s17 = int_to_ptr.vmem [resolvable:$false] %s1997_s17 }
  0x9c   : > { %p1995_p8 = pnand %p1994_p2, %p2567_p5  ;;  %s1999_s21 = scalar_lea.vmem %s1998_s17, 256 }
  0x9d   : > { %p2000_p11 = scmp.lt.s32.totalorder %s2471_s15, %s1998_s17  ;;  %p2001_p12 = scmp.lt.s32.totalorder %s1999_s21, %s1993_s28 }
  0x9e   : > { %p1996_p7 = pneg %p1995_p8 }
  0x9f   : > { %p2002_p1 = por %p2001_p12, %p2000_p11 }
  0xa1   : > { %p2003_p3 = pnand %p2002_p1, %p1996_p7 }
 0x123   : > { %v579_v2 = vpop.xlane.xlu0 %578 }
 0x124   : > { %v581_v3 = vmul.f32 0.03125, %v579_v2 }
 0x126   : > { %v582_v4 = vsub.f32 %v2352_v0, %v581_v3 }
 0x128   : > { %v583_v5 = vmul.f32 %v582_v4, %v582_v4 }
 0x12a   : > { %v584_v6 = vsel %vm576_vm0, %v583_v5, 0.0 }
 0x12b   : > { %585 = vadd.xlane.f32.xlu0 %v584_v6 }
 0x1b4   : > { %v586_v10 = vpop.xlane.xlu0 %585 }
 0x1b5   : > { %v587_v11 = vmul.f32 0.03125, %v586_v10 }
 0x1b7   : > { %v588_v12 = vadd.f32 1e-05, %v587_v11 }
 0x1b9   : > { %1795 = vrsqrt.f32 %v588_v12 }
 0x1c6   : > { %v1796_v13 = vpop.eup %1795 }
 0x1c7   : > { %v590_v15 = vmul.f32 %v1796_v13, %v582_v4 }
 0x1c9   : > { %v597_v17 = vmul.f32 %v1555_v14, %v590_v15 }
 0x1cb   : > { %v604_v18 = vadd.f32 %v1556_v16, %v597_v17 }
 0x1cd   : > { %v605_v19 = vpack.c.bf16 %v604_v18, %v604_v18 }
 0x1cf   : > { %1612 = vmatmul.mubr.msk.bf16.vlgmr.msra.gmra.mxu0 %vm576_vm0, %v605_v19 }
 0x1d0   : > { %1623 = vmatprep.mubr.msk.bf16.mxu0 %vm2079_vm1, %v2078_v8 }
 0x28f   : > { %v666_v21 = vpop.f32.mrf.mxu0 }
 0x290   : > { %v667_v22 = vadd.f32 %v1557_v20, %v666_v21 }
 0x291   : > { %v1613_v23 = vpop.f32.mrf.mxu0 }
 0x292   : > { %675 = vxpose.xlu1.b32.start.end [1/1] (short) (narrow) %v667_v22, 96 }
 0x293   : > { %v669_v24 = vpop.f32.mrf.mxu0 }
 0x295   : > { %v1614_v25 = vpop.f32.mrf.mxu0 }
 0x30e   : > { %v691_v26 = vpop.trf.xlu1 }
 0x30f   : > { %707 = vxpose.xlu0.b32.start [1/2] (short) (narrow) %v691_v26, 8  ;;  %v1787_v26 = vld [vmem:[%s2519_s6 + $0x8] sm:$0xff]  }
 0x312   : > { %v692_v27 = vpop.trf.xlu1 }
 0x313   : > { %708 = vxpose.xlu0.b32.end [2/2] (short) (narrow) %v692_v27, 8  ;;  %v1788_v27 = vld [vmem:[%s2519_s6] sm:$0xff]  }
 0x316   : > { %v693_v28 = vpop.trf.xlu1 }
 0x31a   : > { %v694_v29 = vpop.trf.xlu1 }
 0x31e   : > { %v695_v30 = vpop.trf.xlu1 }
 0x322   : > { %v696_v31 = vpop.trf.xlu1 }
 0x326   : > { %v697_v32 = vpop.trf.xlu1 }
 0x327   : > { %v1776_v33 = vpack.i.bf16 %v697_v32, %v695_v30  ;;  %v1062_v30 = vand.u32 127, %v842_v54 }
 0x329   : > { %1777 = vxpose.xlu1.b32.start [1/2] (short) (narrow) %v1776_v33, 8 }
 0x32a   : > { %v698_v34 = vpop.trf.xlu1 }
 0x32b   : > { %v1778_v35 = vpack.i.bf16 %v698_v34, %v696_v31  ;;  %v1065_v31 = vsub.s32 %v1062_v30, %v843_v57 }
 0x32d   : > { %1779 = vxpose.xlu1.b32.end [2/2] (short) (narrow) %v1778_v35, 8 }
 0x32e   : > { %v2375_v36 = vpop.trf.xlu1 }
 0x331   : > { %739 = vxpose.xlu1.b32.start [1/2] (short) (narrow) %v693_v28, 8 }
 0x332   : > { %v2377_v37 = vpop.trf.xlu1 }
 0x333   : > { %v961_v38 = vpack.c.bf16 %v2377_v37, %v2375_v36 }
 0x335   : > { %740 = vxpose.xlu1.b32.end [2/2] (short) (narrow) %v694_v29, 8 }
 0x336   : > { %v2381_v39 = vpop.trf.xlu1 }
 0x33a   : > { %v2383_v40 = vpop.trf.xlu1 }
 0x33b   : > { %v962_v25 = vpack.c.bf16 %v2383_v40, %v2381_v39 }
 0x38b   : > { %v723_v44 = vpop.trf.xlu0 }
 0x38c   : > { %v771_v49 = vmul.f32 0.25, %v723_v44 }
 0x38e   : > { %v837_v51 = vpack.c.bf16 %v771_v49, %v771_v49 }
 0x3a5   : > { %v1780_v41 = vpop.trf.xlu1 }
 0x3a6   : > { %v1784_v42 = vunpack.i.h.bf16 %v1780_v41  ;;  %v1781_v43 = vunpack.i.l.bf16 %v1780_v41 }
 0x3a8   : > { %v839_v45 = vpack.c.bf16 %v1781_v43, %v1781_v43  ;;  %v840_v46 = vpack.c.bf16 %v1784_v42, %v1784_v42 }
 0x3aa   : > { %v852_v47 = vsel %vm847_vm2, %v839_v45, 0  ;;  %v898_v48 = vsel %vm847_vm2, %v840_v46, 0 }
 0x3ab   : > { %1616 = vmatpush3.bf16.xpose.msra.mxu1 %v852_v47  ;;  %1622 = vmatpush3.bf16.xpose.msra.mxu0 %v898_v48 }
 0x3ac   : > { %1627 = vmatprep.subr.bf16.mxu1 %v2078_v8  ;;  %1633 = vmatprep.subr.bf16.mxu0 %v2078_v8 }
 0x3ad   : > { %v755_v50 = vpop.trf.xlu1 }
 0x3ae   : > { %v772_v52 = vmul.f32 0.25, %v755_v50  ;;  %v1565_v50 = vld [vmem:[#allocation10] ss:$0 sm:$0xff] }
 0x3b0   : > { %v838_v53 = vpack.c.bf16 %v772_v52, %v772_v52 }
 0x3b2   : > { %1618 = vmatmul.mubr.msk.bf16.vlgmr.msra.gmra.mxu1 %vm847_vm2, %v837_v51  ;;  %1624 = vmatmul.mubr.msk.bf16.vlgmr.msra.gmra.mxu0 %vm847_vm2, %v838_v53 }
 0x3b3   : > { %1629 = vmatprep.mubr.msk.bf16.mxu1 %vm2079_vm1, %v2078_v8  ;;  %1635 = vmatprep.mubr.msk.bf16.mxu0 %vm2079_vm1, %v2078_v8 }
 0x472   : > { %v888_v61 = vpop.f32.mrf.mxu1  ;;  %v934_v62 = vpop.f32.mrf.mxu0 }
 0x473   : > { %v889_v63 = vadd.f32 %v888_v61, %v845_v60  ;;  %v935_v1 = vadd.f32 %v934_v62, %v845_v60 }
 0x474   : > { %v1619_v2 = vpop.f32.mrf.mxu1  ;;  %v1625_v3 = vpop.f32.mrf.mxu0 }
 0x475   : > { %v941_v4 = vsel %vm940_vm3, %v889_v63, -inf  ;;  %v944_v5 = vsel %vm940_vm3, %v935_v1, -inf }
 0x476   : > { %942 = vmax.xlane.f32.xlu0 %v941_v4  ;;  %v891_v6 = vpop.f32.mrf.mxu1  ;;  %945 = vmax.xlane.f32.xlu1 %v944_v5  ;;  %v937_v7 = vpop.f32.mrf.mxu0  ;;  %v1569_v5 = vld [vmem:[#allocation11] ss:$0 sm:$0xff] }
 0x477   : > { %v1570_v7 = vld [vmem:[#allocation13] ss:$0 sm:$0xff] }
 0x478   : > { %v1620_v9 = vpop.f32.mrf.mxu1  ;;  %v1626_v10 = vpop.f32.mrf.mxu0 }
 0x4ff   : > { %v943_v11 = vpop.xlane.xlu0 %942  ;;  %v946_v12 = vpop.xlane.xlu1 %945 }
 0x500   : > { %v947_v13 = vsub.f32 %v889_v63, %v943_v11  ;;  %v948_v14 = vsub.f32 %v935_v1, %v946_v12  ;;  %v1789_v63 = vld [vmem:[%s2523_s10 + $0x8] sm:$0xff]   ;;  %v1791_v12 = vld [vmem:[%s2525_s12 + $0x18] sm:$0xff]  }
 0x502   : > { %v949_v15 = vmul.f32 1.442695, %v947_v13  ;;  %v951_v16 = vmul.f32 1.442695, %v948_v14  ;;  %v1792_v13 = vld [vmem:[%s2525_s12 + $0x10] sm:$0xff]   ;;  %v1793_v14 = vld [vmem:[%s2525_s12 + $0x8] sm:$0xff]  }
 0x504   : > { %1797 = vpow2.f32 %v949_v15  ;;  %v1794_v15 = vld [vmem:[%s2525_s12] sm:$0xff]  }
 0x505   : > { %1799 = vpow2.f32 %v951_v16  ;;  %v1571_v16 = vld [vmem:[%s2524_s11] ss:$0 sm:$0xff] }
 0x511   : > { %v1798_v17 = vpop.eup %1797 }
 0x512   : > { %v1800_v18 = vpop.eup %1799  ;;  %v953_v19 = vsel %vm940_vm3, %v1798_v17, 0.0  ;;  %v963_v20 = vpack.c.bf16 %v1798_v17, %v1798_v17 }
 0x513   : > { %954 = vadd.xlane.f32.xlu1 %v953_v19  ;;  %v956_v21 = vsel %vm940_vm3, %v1800_v18, 0.0  ;;  %v964_v22 = vpack.c.bf16 %v1800_v18, %v1800_v18 }
 0x514   : > { %957 = vadd.xlane.f32.xlu0 %v956_v21  ;;  %v969_v23 = vsel %vm940_vm3, %v963_v20, 0 }
 0x515   : > { %1628 = vmatpush3.bf16.xpose.msra.mxu1 %v969_v23  ;;  %v1016_v24 = vsel %vm940_vm3, %v964_v22, 0 }
 0x516   : > { %1634 = vmatpush3.bf16.xpose.msra.mxu0 %v1016_v24  ;;  %1639 = vmatprep.subr.bf16.mxu1 %v2078_v8 }
 0x517   : > { %1647 = vmatprep.subr.bf16.mxu0 %v2078_v8 }
 0x51c   : > { %1630 = vmatmul.mubr.msk.bf16.vlgmr.msra.gmra.mxu1 %vm940_vm3, %v961_v38 }
 0x51d   : > { %1636 = vmatmul.mubr.msk.bf16.vlgmr.msra.gmra.mxu0 %vm940_vm3, %v962_v25  ;;  %1643 = vmatprep.mubr.msk.bf16.mxu1 %vm2079_vm1, %v2078_v8 }
 0x51e   : > { %1651 = vmatprep.mubr.msk.bf16.mxu0 %vm2079_vm1, %v2078_v8  ;;  %1640 = vmatpush3.bf16.msra.mxu1 %v1787_v26 }
 0x51f   : > { %1641 = vmatprep.subr.bf16.mxu1 %v2078_v8  ;;  %1648 = vmatpush3.bf16.msra.mxu0 %v1789_v63 }
 0x520   : > { %1649 = vmatprep.subr.bf16.mxu0 %v2078_v8 }
 0x522   : > { %1642 = vmatpush3.bf16.msra.mxu1 %v1788_v27 }
 0x523   : > { %1655 = vmatprep.subr.bf16.mxu1 %v2078_v8 }
 0x59c   : > { %v955_v28 = vpop.xlane.xlu1 %954 }
 0x59d   : > { %1801 = vrcp.f32 %v955_v28  ;;  %v958_v29 = vpop.xlane.xlu0 %957 }
 0x59e   : > { %1803 = vrcp.f32 %v958_v29 }
 0x5aa   : > { %v1802_v32 = vpop.eup %1801 }
 0x5ab   : > { %v1066_v33 = vrot.slane %v1802_v32, %v1065_v31  ;;  %v1804_v39 = vpop.eup %1803 }
 0x5ac   : > { %v1070_v44 = vrot.slane %v1804_v39, %v1065_v31  ;;  %v1575_v31 = vld [vmem:[%s2526_s13] ss:$0 sm:$0xff] }
 0x5dc   : > { %v1005_v34 = vpop.f32.mrf.mxu1 }
 0x5dd   : > { %v1091_v35 = vmul.f32 %v1066_v33, %v1005_v34  ;;  %v1052_v36 = vpop.f32.mrf.mxu0 }
 0x5de   : > { %v1631_v37 = vpop.f32.mrf.mxu1  ;;  %v1093_v46 = vmul.f32 %v1070_v44, %v1052_v36 }
 0x5df   : > { %v1637_v38 = vpop.f32.mrf.mxu0  ;;  %1095 = vxpose.xlu1.b32.start [1/4] (short) (narrow) %v1091_v35, 8 }
 0x5e0   : > { %v1008_v40 = vpop.f32.mrf.mxu1 }
 0x5e1   : > { %v1092_v41 = vmul.f32 %v1066_v33, %v1008_v40  ;;  %v1055_v42 = vpop.f32.mrf.mxu0 }
 0x5e2   : > { %v1632_v43 = vpop.f32.mrf.mxu1  ;;  %v1094_v47 = vmul.f32 %v1070_v44, %v1055_v42 }
 0x5e3   : > { %v1638_v45 = vpop.f32.mrf.mxu0  ;;  %1096 = vxpose.xlu1.b32.cont [2/4] (short) (narrow) %v1092_v41, 8 }
 0x5e7   : > { %1097 = vxpose.xlu1.b32.cont [3/4] (short) (narrow) %v1093_v46, 8 }
 0x5eb   : > { %1098 = vxpose.xlu1.b32.end [4/4] (short) (narrow) %v1094_v47, 8 }
 0x65b   : > { %v1111_v48 = vpop.trf.xlu1 }
 0x65c   : > { %v1127_v49 = vpack.c.bf16 %v1111_v48, %v1111_v48 }
 0x65e   : > { %1644 = vmatmul.mubr.msk.bf16.vlgmr.msra.gmra.mxu1 %vm576_vm0, %v1127_v49 }
 0x65f   : > { %1663 = vmatprep.mubr.msk.bf16.mxu1 %vm2079_vm1, %v2078_v8  ;;  %1656 = vmatpush3.bf16.msra.mxu1 %v1791_v12 }
 0x660   : > { %1657 = vmatprep.subr.bf16.mxu1 %v2078_v8 }
 0x663   : > { %1658 = vmatpush3.bf16.msra.mxu1 %v1792_v13 }
 0x664   : > { %1659 = vmatprep.subr.bf16.mxu1 %v2078_v8 }
 0x667   : > { %1660 = vmatpush3.bf16.msra.mxu1 %v1793_v14 }
 0x668   : > { %1661 = vmatprep.subr.bf16.mxu1 %v2078_v8 }
 0x66b   : > { %1662 = vmatpush3.bf16.msra.mxu1 %v1794_v15 }
 0x71e   : > { %v1188_v51 = vpop.f32.mrf.mxu1 }
 0x71f   : > { %v1189_v52 = vadd.f32 %v1565_v50, %v1188_v51 }
 0x720   : > { %v1645_v53 = vpop.f32.mrf.mxu1 }
 0x721   : > { %v2428_v54 = vadd.f32 %v1189_v52, %v2352_v0  ;;  %v1790_v0 = vld [vmem:[%s2523_s10] sm:$0xff]  }
 0x722   : > { %v1191_v55 = vpop.f32.mrf.mxu1  ;;  %1650 = vmatpush3.bf16.msra.mxu0 %v1790_v0 }
 0x723   : > { %v1197_v56 = vsel %vm576_vm0, %v2428_v54, 0.0 }
 0x724   : > { %1198 = vadd.xlane.f32.xlu0 %v1197_v56  ;;  %v1646_v57 = vpop.f32.mrf.mxu1 }
 0x7ad   : > { %v1199_v58 = vpop.xlane.xlu0 %1198 }
 0x7ae   : > { %v1200_v59 = vmul.f32 0.03125, %v1199_v58 }
 0x7b0   : > { %v1201_v60 = vsub.f32 %v2428_v54, %v1200_v59 }
 0x7b2   : > { %v1202_v61 = vmul.f32 %v1201_v60, %v1201_v60 }
 0x7b4   : > { %v1203_v62 = vsel %vm576_vm0, %v1202_v61, 0.0 }
 0x7b5   : > { %1204 = vadd.xlane.f32.xlu0 %v1203_v62 }
 0x83e   : > { %v1205_v1 = vpop.xlane.xlu0 %1204 }
 0x83f   : > { %v1206_v2 = vmul.f32 0.03125, %v1205_v1 }
 0x841   : > { %v1207_v3 = vadd.f32 1e-05, %v1206_v2 }
 0x843   : > { %1805 = vrsqrt.f32 %v1207_v3 }
 0x850   : > { %v1806_v4 = vpop.eup %1805 }
 0x851   : > { %v1209_v6 = vmul.f32 %v1806_v4, %v1201_v60 }
 0x853   : > { %v1216_v9 = vmul.f32 %v1569_v5, %v1209_v6 }
 0x855   : > { %v1223_v10 = vadd.f32 %v1570_v7, %v1216_v9 }
 0x857   : > { %v1224_v11 = vpack.c.bf16 %v1223_v10, %v1223_v10 }
 0x859   : > { %1652 = vmatmul.mubr.msk.bf16.vlgmr.msra.gmra.mxu0 %vm576_vm0, %v1224_v11 }
 0x919   : > { %v1285_v17 = vpop.f32.mrf.mxu0 }
 0x91a   : > { %v1286_v18 = vadd.f32 %v1571_v16, %v1285_v17 }
 0x91b   : > { %v1653_v19 = vpop.f32.mrf.mxu0 }
 0x91c   : > { %v1292_v20 = vmul.f32 0.044715, %v1286_v18  ;;  %v1291_v8 = vmul.f32 0.5, %v1286_v18 }
 0x91d   : > { %v1288_v21 = vpop.f32.mrf.mxu0 }
 0x91e   : > { %v1293_v22 = vmul.f32 %v1292_v20, %v1286_v18 }
 0x91f   : > { %v1654_v23 = vpop.f32.mrf.mxu0 }
 0x920   : > { %v1294_v24 = vmul.f32 %v1293_v22, %v1286_v18 }
 0x922   : > { %v1295_v25 = vadd.f32 %v1294_v24, %v1286_v18 }
 0x924   : > { %v1296_v26 = vmul.f32 0.7978846, %v1295_v25 }
 0x926   : > { %1807 = vtanh.f32 %v1296_v26 }
 0x933   : > { %v1808_v27 = vpop.eup %1807 }
 0x934   : > { %v1298_v28 = vadd.f32 1.0, %v1808_v27 }
 0x936   : > { %v1299_v29 = vmul.f32 %v1298_v28, %v1291_v8 }
 0x938   : > { %v1300_v30 = vpack.c.bf16 %v1299_v29, %v1299_v29 }
 0x93a   : > { %1664 = vmatmul.mubr.msk.bf16.vlgmr.msra.gmra.mxu1 %vm1340_vm4, %v1300_v30 }
 0x9fa   : > { %v1378_v32 = vpop.f32.mrf.mxu1 }
 0x9fb   : > { %v1379_v33 = vadd.f32 %v1575_v31, %v1378_v32 }
 0x9fc   : > { %v1665_v34 = vpop.f32.mrf.mxu1 }
 0x9fd   : > { %v1384_v35 = vadd.f32 %v1379_v33, %v2428_v54 }
 0x9fe   : > { %v1381_v36 = vpop.f32.mrf.mxu1 }
 0x9ff   : > { %1385 = vst.msk [vmem:[%s567_s7] sm:$0xff] %vm576_vm0, %v1384_v35 }
 0xa00   : > { %v1666_v37 = vpop.f32.mrf.mxu1 }
 0xa01   : > { %2006 = shalt.err (!%p2003_p3)
}
 0xa02   : > { %s2007_s27 = scalar_lea.hbm %s2469_s22, 128  ;;  %s2011_s9 = scalar_lea.hbm %s2566_s18, 256 }
 0xa03   : > { %p2008_p6 = scmp.ne.s32.totalorder %s2469_s22, %s2007_s27  ;;  %p2012_p10 = scmp.lt.s32.totalorder %s2469_s22, %s2566_s18 }
 0xa04   : > { %p2013_p13 = scmp.lt.s32.totalorder %s2011_s9, %s2007_s27 }
 0xa05   : > { %p2009_p4 = pnand %p2008_p6, %p2567_p5 }
 0xa06   : > { %p2014_p0 = por %p2013_p13, %p2012_p10 }
 0xa07   : > { %p2010_p9 = pneg %p2009_p4 }
 0xa09   : > { %p2015_p2 = pnand %p2014_p0, %p2010_p9 }
 0xa0b   : > { %2018 = shalt.err (!%p2015_p2)
}
 0xa0c   : > { %1693 = dma.vmem_to_hbm [thread:$0]  (%p2567_p5), %s2471_s15, 128, %s2469_s22, %s1387_s19  }
 0xa0d PF: > { %s1412_s7 = sand.u32 1, %s2057_s29   ;;  %p2568_p8 = scmp.ne.s32.totalorder %s2556_s24, 0 }
 0xa0e   : > { %p2569_p7 = scmp.ge.s32.totalorder %s2069_s16, 2  ;;  %s1413_s20 = scalar_lea.sflag [#allocation4], %s1412_s7 }
 0xa10   : > { %p1719_p11 = pnand %p2569_p7, %p2568_p8 }
 0xa12   : > { %p1720_p12 = pneg %p1719_p11 }
 0xa14   : > { %2052 = dma.done.wait (%p1720_p12), %s1413_s20, 128  }
 0xa15   : > { %2054 = vsyncadd (%p1720_p12), %s1413_s20, 4294967168  ;;  %s2570_s23 = sld [smem:[#allocation20_spill]]  ;;  %p30_p1 = scmp.ge.s32.totalorder %s2264_s25, 4  }
 0xa16   : > { %s2571_s15 = sld [smem:[#allocation21_spill]]  ;;  %s2572_s29 = smov %s2061_s30 }
 0xa17   : > { %s2574_s16 = smov %s2264_s25  ;;  %32 = sbr.rel (!%p30_p1) target bundleno = 16 (0x10), region = 148 }
 0xa1b   : > { %s2573_s30 = smov %s2570_s23 }
 0xa1c   :  { %1418 = vsyncpa [#allocation3], 1 }
 0xa1d   :  { %1420 = vsyncpa [#allocation3 + $0x1], 1 }
 0xa1e   :  { %1421 = vsyncpa [#allocation6], 1 }
 0xa1f   :  { %1422 = vsyncpa [#allocation9], 1 }
 0xa20   :  { %1423 = vsyncpa [#allocation12], 1 }
 0xa21   :  { %1424 = vsyncpa [#allocation4], 1 }
 0xa22   :  { %1426 = vsyncpa [#allocation4 + $0x1], 1 }

</bundles_post_ra>
